<compile_context>
chip_gen: v6e
topology: v6e:2x2x1
jax: 0.10.0
libtpu: 0.0.40
codegen_flags: <defaults>
</compile_context>

<pallas_src>
import functools

import jax
import jax.numpy as jnp
import numpy as np
from jax.experimental import pallas as pl
from jax.experimental.pallas import tpu as pltpu

LANE = 128  # lane width / lane-dense padding


# ----------------------------------------------------------------------------
# Packed-slab layouts
# ----------------------------------------------------------------------------
def _weight_layout(f_in, hidden):
    """Row offsets of each operand inside the packed (rows, LANE) weight slab."""
    r_w1 = 0
    r_w2 = r_w1 + f_in
    r_b1 = r_w2 + hidden
    r_b2 = r_b1 + 1
    r_w34 = r_b2 + 1
    r_b34 = r_w34 + hidden
    rows = r_b34 + 1
    rows_padded = ((rows + 7) // 8) * 8  # sublane-align
    return dict(r_w1=r_w1, r_w2=r_w2, r_b1=r_b1, r_b2=r_b2,
                r_w34=r_w34, r_b34=r_b34, rows=rows_padded)


def pack_weights(params):
    """Pack all weights/biases (with Linear1+Linear2 pre-fused) into one slab."""
    (w1, b1, w2, b2, w3, b3, w4, b4) = params
    f_in, hidden = w1.shape
    num_outputs = w4.shape[1]
    assert num_outputs <= LANE
    lay = _weight_layout(f_in, hidden)

    # Fuse the two bias-linears (no nonlinearity between them).
    w34 = w3 @ w4                     # (hidden, num_outputs)
    b34 = b3 @ w4 + b4                # (1, num_outputs)

    slab = jnp.zeros((lay["rows"], LANE), jnp.float32)
    slab = slab.at[lay["r_w1"]:lay["r_w1"] + f_in, 0:hidden].set(w1)
    slab = slab.at[lay["r_w2"]:lay["r_w2"] + hidden, 0:hidden].set(w2)
    slab = slab.at[lay["r_b1"], 0:hidden].set(b1[0])
    slab = slab.at[lay["r_b2"], 0:hidden].set(b2[0])
    slab = slab.at[lay["r_w34"]:lay["r_w34"] + hidden, 0:num_outputs].set(w34)
    slab = slab.at[lay["r_b34"], 0:num_outputs].set(b34[0])
    return slab, lay


def pack_data(a_hat, x):
    """Pack per-graph (A_hat, X) into one lane-dense (B, 2N, LANE) slab."""
    bsz, n, _ = a_hat.shape
    f_in = x.shape[-1]
    data = jnp.zeros((bsz, 2 * n, LANE), jnp.float32)
    data = data.at[:, 0:n, 0:n].set(a_hat)
    data = data.at[:, n:2 * n, 0:f_in].set(x)
    return data


# ----------------------------------------------------------------------------
# Pallas kernel: full GCN forward for one graph per grid step.
# ----------------------------------------------------------------------------
def _gcn_kernel(data_ref, w_ref, out_ref, *, n, f_in, hidden, lay):
    # data_ref: (1, 2N, LANE)  rows 0:N = A_hat, rows N:2N = X (zero lane-pad)
    # w_ref   : (R, LANE)      packed weights (VMEM-resident across the grid)
    # out_ref : (1, N, LANE)   lane-dense output slab
    tile = data_ref[0]                                     # (2N, LANE) full-lane load
    wall = w_ref[...]                                      # (R, LANE)  full-lane load

    a = tile[0:n, 0:n]                                     # (N, N) normalized adjacency
    x = tile[n:2 * n, 0:f_in]                              # (N, F_in)

    w1 = wall[lay["r_w1"]:lay["r_w1"] + f_in, 0:hidden]    # (F_in, H)
    w2 = wall[lay["r_w2"]:lay["r_w2"] + hidden, 0:hidden]  # (H, H)
    b1 = wall[lay["r_b1"]:lay["r_b1"] + 1, 0:hidden]       # (1, H)
    b2 = wall[lay["r_b2"]:lay["r_b2"] + 1, 0:hidden]       # (1, H)
    w34 = wall[lay["r_w34"]:lay["r_w34"] + hidden, :]      # (H, LANE)
    b34 = wall[lay["r_b34"]:lay["r_b34"] + 1, :]           # (1, LANE)

    # --- GCNConv 1: (A @ X) @ W1 + b1, ReLU (cheaper order: F_in < hidden) ---
    ax = jnp.dot(a, x, preferred_element_type=jnp.float32)            # (N, F_in)
    h = jnp.dot(ax, w1, preferred_element_type=jnp.float32) + b1
    h = jnp.maximum(h, 0.0)

    # --- GCNConv 2: A @ (H @ W2) + b2, ReLU ----------------------------------
    h = jnp.dot(h, w2, preferred_element_type=jnp.float32)
    h = jnp.dot(a, h, preferred_element_type=jnp.float32) + b2
    h = jnp.maximum(h, 0.0)

    # --- Fused Linear1+Linear2 (lane-padded to LANE output columns) ----------
    o = jnp.dot(h, w34, preferred_element_type=jnp.float32) + b34     # (N, LANE)
    out_ref[...] = o[None].astype(out_ref.dtype)                      # unmasked store


# ----------------------------------------------------------------------------
# Wrapper: batched forward over B graphs in one pallas_call
# ----------------------------------------------------------------------------
@jax.jit
def gcn_forward(a_hat, x, params):
    """a_hat: (B, N, N) precomputed normalized adjacencies; x: (B, N, F_in)."""
    bsz, n, f_in = x.shape
    hidden = params[0].shape[1]
    num_outputs = params[6].shape[1]

    data = pack_data(a_hat, x)                  # (B, 2N, LANE)
    wslab, lay = pack_weights(params)           # (R, LANE)

    kernel = functools.partial(_gcn_kernel, n=n, f_in=f_in, hidden=hidden, lay=lay)

    out_pad = pl.pallas_call(
        kernel,
        out_shape=jax.ShapeDtypeStruct((bsz, n, LANE), jnp.float32),
        grid=(bsz,),
        in_specs=[
            pl.BlockSpec((1, 2 * n, LANE), lambda b: (b, 0, 0)),        # per-graph data
            pl.BlockSpec((lay["rows"], LANE), lambda b: (0, 0)),        # resident weights
        ],
        out_specs=pl.BlockSpec((1, n, LANE), lambda b: (b, 0, 0)),
        compiler_params=pltpu.CompilerParams(
            dimension_semantics=("parallel",)),                          # 2x on v7x megacore
    )(data, wslab)
    return out_pad[:, :, :num_outputs]


# ----------------------------------------------------------------------------
# Glue (hoisted out of the hot path): dense symmetric-normalized adjacency
# ----------------------------------------------------------------------------
def build_norm_adj(edge_index, num_nodes):
    # Matches PyG gcn_norm for graphs with no pre-existing self-loops/duplicates.
    src = edge_index[0]
    dst = edge_index[1]
    adj = jnp.zeros((num_nodes, num_nodes), jnp.float32).at[dst, src].add(1.0)
    adj = adj + jnp.eye(num_nodes, dtype=jnp.float32)          # add self loops
    deg = adj.sum(axis=1)
    dinv = jnp.where(deg > 0.0, 1.0 / jnp.sqrt(deg), 0.0)
    return dinv[:, None] * adj * dinv[None, :]                 # D^-1/2 (A+I) D^-1/2


# ----------------------------------------------------------------------------
# Deterministic parameter init (same shapes as the PyTorch module)
# ----------------------------------------------------------------------------
def init_params(key, num_inputs, hidden_channels, num_outputs):
    k = jax.random.split(key, 8)

    def glorot(k_, shape):
        lim = jnp.sqrt(6.0 / (shape[0] + shape[1]))
        return jax.random.uniform(k_, shape, jnp.float32, -lim, lim)

    w1 = glorot(k[0], (num_inputs, hidden_channels))
    b1 = jnp.zeros((1, hidden_channels), jnp.float32)
    w2 = glorot(k[1], (hidden_channels, hidden_channels))
    b2 = jnp.zeros((1, hidden_channels), jnp.float32)
    w3 = glorot(k[2], (hidden_channels, 4))
    b3 = jax.random.uniform(k[3], (1, 4), jnp.float32, -0.1, 0.1)
    w4 = glorot(k[4], (4, num_outputs))
    b4 = jax.random.uniform(k[5], (1, num_outputs), jnp.float32, -0.1, 0.1)
    return (w1, b1, w2, b2, w3, b3, w4, b4)


# Pure-JAX reference (un-fused, original matmul order) for correctness check
def gcn_reference(a_hat, x, params):
    (w1, b1, w2, b2, w3, b3, w4, b4) = params
    h = jnp.maximum(a_hat @ (x @ w1) + b1, 0.0)
    h = jnp.maximum(a_hat @ (h @ w2) + b2, 0.0)
    h = h @ w3 + b3
    return h @ w4 + b4


if __name__ == "__main__":
    batch = 8            # graphs per pallas_call
    num_nodes = 16
    num_inputs = 4
    hidden_channels = 32
    num_outputs = 1

    key = jax.random.PRNGKey(0)
    k_x, k_p = jax.random.split(key)

    # Node features (batch, num_nodes, num_inputs)
    x = jax.random.normal(k_x, (batch, num_nodes, num_inputs), jnp.float32)

    # Deterministic per-graph edges: ring graphs with varying stride, both
    # directions; shape (2, 2N).  No self-loops / duplicate edges (PyG match).
    a_hat_list = []
    for g in range(batch):
        stride = 1 + (g % 3)
        src = np.arange(num_nodes)
        dst = (src + stride) % num_nodes
        edge_index = jnp.asarray(
            np.stack([np.concatenate([src, dst]), np.concatenate([dst, src])]),
            dtype=jnp.int32,
        )
        # Precomputed once per graph: hoisted out of the forward hot path.
        a_hat_list.append(build_norm_adj(edge_index, num_nodes))
    a_hat = jnp.stack(a_hat_list, axis=0)            # (batch, N, N)

    params = init_params(k_p, num_inputs, hidden_channels, num_outputs)

    out = gcn_forward(a_hat, x, params)
    out = jax.block_until_ready(out)

    ref = jax.vmap(gcn_reference, in_axes=(0, 0, None))(a_hat, x, params)
    np.testing.assert_allclose(np.asarray(out), np.asarray(ref),
                               rtol=1e-5, atol=1e-5)
    print("KERNEL_OK")
</pallas_src>

<mosaic_0001>
module attributes {stable_mosaic.version = 11 : i64} {
  func.func @_gcn_kernel(%arg0: i32, %arg1: memref<1x32x128xf32, #tpu.memory_space<vmem>>, %arg2: memref<72x128xf32, #tpu.memory_space<vmem>>, %arg3: memref<1x16x128xf32, #tpu.memory_space<vmem>>) attributes {dimension_semantics = [#tpu.dimension_semantics<parallel>], iteration_bounds = array<i64: 8>, scalar_prefetch = 0 : i64, scratch_operands = 0 : i64, tpu.core_type = #tpu.core_type<tc>, window_params = [{transform_indices = @transform_0, window_bounds = array<i64: 1, 32, 128>}, {pipeline_mode = #tpu.pipeline_mode<synchronous>, transform_indices = @transform_1, window_bounds = array<i64: 72, 128>}, {transform_indices = @transform_2, window_bounds = array<i64: 1, 16, 128>}]} {
    %c0 = arith.constant 0 : index
    %c0_0 = arith.constant 0 : index
    %c0_1 = arith.constant 0 : index
    %0 = vector.load %arg1[%c0, %c0_0, %c0_1] : memref<1x32x128xf32, #tpu.memory_space<vmem>>, vector<1x32x128xf32>
    %1 = vector.shape_cast %0 : vector<1x32x128xf32> to vector<32x128xf32>
    %c0_2 = arith.constant 0 : index
    %c0_3 = arith.constant 0 : index
    %2 = vector.load %arg2[%c0_2, %c0_3] : memref<72x128xf32, #tpu.memory_space<vmem>>, vector<72x128xf32>
    %3 = vector.extract_strided_slice %1 {offsets = [0, 0], sizes = [16, 16], strides = [1, 1]} : vector<32x128xf32> to vector<16x16xf32>
    %4 = vector.extract_strided_slice %1 {offsets = [16, 0], sizes = [16, 4], strides = [1, 1]} : vector<32x128xf32> to vector<16x4xf32>
    %5 = vector.extract_strided_slice %2 {offsets = [0, 0], sizes = [4, 32], strides = [1, 1]} : vector<72x128xf32> to vector<4x32xf32>
    %6 = vector.extract_strided_slice %2 {offsets = [4, 0], sizes = [32, 32], strides = [1, 1]} : vector<72x128xf32> to vector<32x32xf32>
    %7 = vector.extract_strided_slice %2 {offsets = [36, 0], sizes = [1, 32], strides = [1, 1]} : vector<72x128xf32> to vector<1x32xf32>
    %8 = vector.extract_strided_slice %2 {offsets = [37, 0], sizes = [1, 32], strides = [1, 1]} : vector<72x128xf32> to vector<1x32xf32>
    %9 = vector.extract_strided_slice %2 {offsets = [38, 0], sizes = [32, 128], strides = [1, 1]} : vector<72x128xf32> to vector<32x128xf32>
    %10 = vector.extract_strided_slice %2 {offsets = [70, 0], sizes = [1, 128], strides = [1, 1]} : vector<72x128xf32> to vector<1x128xf32>
    %cst = arith.constant dense<0.000000e+00> : vector<16x4xf32>
    %11 = tpu.matmul %3, %4, %cst {dimension_numbers = #tpu.dot_dimension_numbers<[1], [0], [0], [1], [0, 0, 1, 1], [], []>} : vector<16x16xf32>, vector<16x4xf32>, vector<16x4xf32> -> vector<16x4xf32>
    %cst_4 = arith.constant dense<0.000000e+00> : vector<16x32xf32>
    %12 = tpu.matmul %11, %5, %cst_4 {dimension_numbers = #tpu.dot_dimension_numbers<[1], [0], [0], [1], [0, 0, 1, 1], [], []>} : vector<16x4xf32>, vector<4x32xf32>, vector<16x32xf32> -> vector<16x32xf32>
    %13 = vector.broadcast %7 : vector<1x32xf32> to vector<16x32xf32>
    %14 = arith.addf %12, %13 : vector<16x32xf32>
    %cst_5 = arith.constant 0.000000e+00 : f32
    %15 = vector.broadcast %cst_5 : f32 to vector<16x32xf32>
    %16 = arith.maximumf %14, %15 : vector<16x32xf32>
    %cst_6 = arith.constant dense<0.000000e+00> : vector<16x32xf32>
    %17 = tpu.matmul %16, %6, %cst_6 {dimension_numbers = #tpu.dot_dimension_numbers<[1], [0], [0], [1], [0, 0, 1, 1], [], []>} : vector<16x32xf32>, vector<32x32xf32>, vector<16x32xf32> -> vector<16x32xf32>
    %cst_7 = arith.constant dense<0.000000e+00> : vector<16x32xf32>
    %18 = tpu.matmul %3, %17, %cst_7 {dimension_numbers = #tpu.dot_dimension_numbers<[1], [0], [0], [1], [0, 0, 1, 1], [], []>} : vector<16x16xf32>, vector<16x32xf32>, vector<16x32xf32> -> vector<16x32xf32>
    %19 = vector.broadcast %8 : vector<1x32xf32> to vector<16x32xf32>
    %20 = arith.addf %18, %19 : vector<16x32xf32>
    %cst_8 = arith.constant 0.000000e+00 : f32
    %21 = vector.broadcast %cst_8 : f32 to vector<16x32xf32>
    %22 = arith.maximumf %20, %21 : vector<16x32xf32>
    %cst_9 = arith.constant dense<0.000000e+00> : vector<16x128xf32>
    %23 = tpu.matmul %22, %9, %cst_9 {dimension_numbers = #tpu.dot_dimension_numbers<[1], [0], [0], [1], [0, 0, 1, 1], [], []>} : vector<16x32xf32>, vector<32x128xf32>, vector<16x128xf32> -> vector<16x128xf32>
    %24 = vector.broadcast %10 : vector<1x128xf32> to vector<16x128xf32>
    %25 = arith.addf %23, %24 : vector<16x128xf32>
    %26 = vector.shape_cast %25 : vector<16x128xf32> to vector<1x16x128xf32>
    %c0_10 = arith.constant 0 : index
    %c0_11 = arith.constant 0 : index
    %c0_12 = arith.constant 0 : index
    %27 = vector.load %arg3[%c0_10, %c0_11, %c0_12] : memref<1x16x128xf32, #tpu.memory_space<vmem>>, vector<1x16x128xf32>
    tpu.vector_store %arg3[%c0_10, %c0_11, %c0_12], %26 {strides = array<i32>} : memref<1x16x128xf32, #tpu.memory_space<vmem>>, vector<1x16x128xf32>,
    return
  }
  func.func @transform_0(%arg0: i32) -> (i32, i32, i32) {
    %c0_i32 = arith.constant 0 : i32
    %c0_i32_0 = arith.constant 0 : i32
    %c0_i32_1 = arith.constant 0 : i32
    return %arg0, %c0_i32, %c0_i32_0 : i32, i32, i32
  }
  func.func @transform_1(%arg0: i32) -> (i32, i32) {
    %c0_i32 = arith.constant 0 : i32
    %c0_i32_0 = arith.constant 0 : i32
    %c0_i32_1 = arith.constant 0 : i32
    return %c0_i32, %c0_i32_0 : i32, i32
  }
  func.func @transform_2(%arg0: i32) -> (i32, i32, i32) {
    %c0_i32 = arith.constant 0 : i32
    %c0_i32_0 = arith.constant 0 : i32
    %c0_i32_1 = arith.constant 0 : i32
    return %arg0, %c0_i32, %c0_i32_0 : i32, i32, i32
  }
}

</mosaic_0001>

<bundles_post_ra>
// kernel: gcn_forward.1
= control target key start
LH: loop header
LB: loop body
LE: loop exit
PB: predicated region body
PF: predicated region fallthrough
CT: control target
= control target key end

     0   :  { %s790_s9 = smov 0   ;;  %s858_s0 = inlined_call_operand.vmem [shape: f32[8,32,128], index: 0, kind: input, shape index: {}]   ;;  %s859_s1 = inlined_call_operand.vmem [shape: f32[72,128], index: 1, kind: input, shape index: {}]   ;;  %s860_s2 = inlined_call_operand.vmem [shape: f32[8,16,128], index: 2, kind: output, shape index: {}]  }
   0x1 LB: > { %s671_s10 = sadd.s32 4294967295, %s773_s9   ;;  %p675_p0 = scmp.ge.s32.totalorder %s773_s9, 1  ;;  %s773_s9 = sphi %s790_s9, %s12_s9  }
   0x2   : > { %p112_p1 = scmp.lt.s32.totalorder %s773_s9, 9 }
   0x4   : > { %p113_p2 = pnand %p675_p0, %p112_p1 }
   0x5   : > { %p134_p3 = scmp.lt.s32.totalorder (!%p113_p2), %s671_s10, 7 }
   0x6   : > { %116 = sbr.rel (%p113_p2) target bundleno = 1010 (0x3f2), region = 28 }
   0xb   : > { %s862_s10 = smov (!%p134_p3, %s671_s10), 7  ;;  %vm157_vm0 = vcmask 130048   ;;  %v148_v4 = vld [vmem:[%s859_s1] sm:$0xff]  ;;  %vm250_vm1 = vcmask 1043456   ;;  %vm243_vm2 = vcmask 31744   ;;  %v151_v8 = vld [vmem:[%s859_s1 + $0x18] sm:$0xff]  ;;  %v239_v20 = vlaneseq }
   0xc   : > { %s693_s11 = sshll.u32 %s862_s10, 5  ;;  %725 = vmatprep.subr.msk.mxu1 %vm250_vm1, %v148_v4  ;;  %v814_v7 = vld [vmem:[%s859_s1 + $0x20] sm:$0xff]  ;;  %v340_v9 = vrot.slane %v151_v8, 4  ;;  %v150_v11 = vld [vmem:[%s859_s1 + $0x10] sm:$0xff]  ;;  %v149_v14 = vld [vmem:[%s859_s1 + $0x8] sm:$0xff]  ;;  %v335_v15 = vrot.slane %v148_v4, 4 }
   0xd   : > { %s138_s14 = scalar_lea.vmem %s858_s0, %s693_s11  ;;  %726 = vmatpush3.msk.msra.mxu1 %vm250_vm1, %v148_v4  ;;  %v342_v10 = vrot.slane %v814_v7, 4  ;;  %v338_v13 = vrot.slane %v150_v11, 4  ;;  %v336_v17 = vrot.slane %v149_v14, 4  ;;  %v240_v21 = vshrl.u32 %v239_v20, 7  ;;  %v155_v32 = vld [vmem:[%s859_s1 + $0x38] sm:$0xff]  ;;  %v156_v33 = vld [vmem:[%s859_s1 + $0x40] sm:$0xff] }
   0xe   : > { %v147_v0 = vld [vmem:[%s138_s14 + $0x18] sm:$0xff]  ;;  %v146_v1 = vld [vmem:[%s138_s14 + $0x10] sm:$0xff]  ;;  %v144_v2 = vld [vmem:[%s138_s14] sm:$0xff]  ;;  %vm348_vm3 = vcmask 261120   ;;  %v525_v34 = vrot.slane %v155_v32, 6  ;;  %v527_v35 = vrot.slane %v156_v33, 6 }
   0xf   : > { %718 = vmatprep.subr.mxu0 %v147_v0  ;;  %722 = vmatprep.mubr.msk.f32.mxu0 %vm157_vm0, %v144_v2  ;;  %v145_v3 = vld [vmem:[%s138_s14 + $0x8] sm:$0xff]  ;;  %v343_v12 = vsel %vm250_vm1, %v340_v9, %v342_v10  ;;  %v341_v16 = vsel %vm250_vm1, %v338_v13, %v340_v9  ;;  %v339_v18 = vsel %vm250_vm1, %v336_v17, %v338_v13  ;;  %v241_v22 = vsub.s32 4, %v240_v21  ;;  %v154_v36 = vld [vmem:[%s859_s1 + $0x30] sm:$0xff]  ;;  %s694_s5 = sshll.u32 %s862_s10, 4 }
  0x10   : > { %719 = vmatpush3.msra.mxu0 %v147_v0  ;;  %730 = vmatprep.subr.mxu1 %v343_v12  ;;  %v337_v19 = vsel %vm250_vm1, %v335_v15, %v336_v17  ;;  %vm519_vm4 = vcmask 1041408   ;;  %v523_v38 = vrot.slane %v154_v36, 6  ;;  %v153_v39 = vld [vmem:[%s859_s1 + $0x28] sm:$0xff]  ;;  %v520_v43 = vrot.slane %v814_v7, 6  ;;  %s143_s8 = scalar_lea.vmem %s860_s2, %s694_s5 }
  0x11   : > { %720 = vmatprep.subr.mxu0 %v146_v1  ;;  %v242_v23 = vrot.slane %v814_v7, %v241_v22  ;;  %v528_v37 = vsel %vm519_vm4, %v525_v34, %v527_v35  ;;  %v521_v41 = vrot.slane %v153_v39, 6  ;;  %v432_v45 = vsub.s32 5, %v240_v21 }
  0x12   : > { %721 = vmatpush3.msra.mxu0 %v146_v1  ;;  %v526_v40 = vsel %vm519_vm4, %v523_v38, %v525_v34  ;;  %v513_v53 = vsub.s32 6, %v240_v21 }
  0x13   : > { %723 = vmatmul.mubr.msk.f32.vlgmr.msra.gmra.mxu0 %vm157_vm0, %v145_v3  ;;  %748 = vmatprep.subr.mxu0 %v528_v37  ;;  %v524_v42 = vsel %vm519_vm4, %v521_v41, %v523_v38  ;;  %v522_v44 = vsel %vm519_vm4, %v520_v43, %v521_v41  ;;  %v433_v46 = vrot.slane %v814_v7, %v432_v45 }
  0x14   : > { %749 = vmatpush3.msra.mxu0 %v528_v37  ;;  %v514_v54 = vrot.slane %v156_v33, %v513_v53 }
  0x15   : > { %750 = vmatprep.subr.mxu0 %v526_v40 }
  0x16   : > { %751 = vmatpush3.msra.mxu0 %v526_v40 }
  0x17   : > { %752 = vmatprep.subr.mxu0 %v524_v42 }
  0x18   : > { %753 = vmatpush3.msra.mxu0 %v524_v42 }
  0x19   : > { %754 = vmatprep.subr.mxu0 %v522_v44 }
  0x1a   : > { %755 = vmatpush3.msra.mxu0 %v522_v44 }
  0xd3   : > { %v724_v5 = vpop.f32.mrf.mxu0 }
  0xd5   : > { %v230_v6 = vpop.f32.mrf.mxu0 }
  0xd6   : > { %727 = vmatprep.mubr.msk.f32.mxu1 %vm243_vm2, %v230_v6 }
  0xd7   : > { %728 = vmatmul.mubr.msk.f32.vlgmr.msra.gmra.mxu1 %vm243_vm2, %v724_v5 }
  0xd8   : > { %731 = vmatpush3.msra.mxu1 %v343_v12 }
  0xd9   : > { %732 = vmatprep.subr.mxu1 %v341_v16 }
  0xda   : > { %733 = vmatpush3.msra.mxu1 %v341_v16 }
  0xdb   : > { %734 = vmatprep.subr.mxu1 %v339_v18 }
  0xdc   : > { %735 = vmatpush3.msra.mxu1 %v339_v18 }
  0xdd   : > { %736 = vmatprep.subr.mxu1 %v337_v19 }
  0xde   : > { %737 = vmatpush3.msra.mxu1 %v337_v19 }
 0x197   : > { %v729_v24 = vpop.f32.mrf.mxu1 }
 0x198   : > { %v326_v25 = vadd.f32 %v729_v24, %v242_v23 }
 0x199   : > { %v320_v26 = vpop.f32.mrf.mxu1 }
 0x19a   : > { %v321_v27 = vadd.f32 %v320_v26, %v242_v23  ;;  %v330_v29 = vmax.f32 %v326_v25, 0.0 }
 0x19c   : > { %v329_v28 = vmax.f32 %v321_v27, 0.0 }
 0x19e   : > { %738 = vmatprep.mubr.msk.f32.mxu1 %vm348_vm3, %v329_v28 }
 0x19f   : > { %739 = vmatmul.mubr.msk.f32.vlgmr.msra.gmra.mxu1 %vm348_vm3, %v330_v29 }
 0x1a0   : > { %745 = vmatprep.mubr.msk.f32.mxu1 %vm157_vm0, %v144_v2 }
 0x25f   : > { %v740_v30 = vpop.f32.mrf.mxu1 }
 0x260   : > { %741 = vmatprep.subr.mxu1 %v740_v30 }
 0x261   : > { %v421_v31 = vpop.f32.mrf.mxu1  ;;  %742 = vmatpush3.msra.mxu1 %v740_v30 }
 0x262   : > { %743 = vmatprep.subr.mxu1 %v421_v31 }
 0x263   : > { %744 = vmatpush3.msra.mxu1 %v421_v31 }
 0x264   : > { %746 = vmatmul.mubr.msk.f32.vlgmr.msra.gmra.mxu1 %vm157_vm0, %v145_v3 }
 0x324   : > { %v747_v47 = vpop.f32.mrf.mxu1 }
 0x325   : > { %v506_v48 = vadd.f32 %v747_v47, %v433_v46 }
 0x326   : > { %v500_v49 = vpop.f32.mrf.mxu1 }
 0x327   : > { %v501_v50 = vadd.f32 %v500_v49, %v433_v46  ;;  %v510_v52 = vmax.f32 %v506_v48, 0.0 }
 0x329   : > { %v509_v51 = vmax.f32 %v501_v50, 0.0 }
 0x32b   : > { %756 = vmatprep.mubr.msk.f32.mxu0 %vm348_vm3, %v509_v51 }
 0x32c   : > { %757 = vmatmul.mubr.msk.f32.vlgmr.msra.gmra.mxu0 %vm348_vm3, %v510_v52 }
 0x3ec   : > { %v758_v55 = vpop.f32.mrf.mxu0 }
 0x3ed   : > { %v611_v56 = vadd.f32 %v758_v55, %v514_v54 }
 0x3ee   : > { %v605_v57 = vpop.f32.mrf.mxu0 }
 0x3ef   : > { %615 = vst [vmem:[%s143_s8 + $0x8] sm:$0xff] %v611_v56  ;;  %v606_v58 = vadd.f32 %v605_v57, %v514_v54 }
 0x3f1   : > { %614 = vst [vmem:[%s143_s8] sm:$0xff] %v606_v58 }
 0x3f2 PF: > { %s12_s9 = sadd.s32 1, %s773_s9  }
 0x3f3   : > { %p9_p4 = scmp.ge.s32.totalorder %s12_s9, 10  }
 0x3f5   :  { %11 = sbr.rel (!%p9_p4) target bundleno = 1 (0x1), region = 58 }

</bundles_post_ra>
